<compile_context>
chip_gen: v6e
topology: v6e:2x2x1
jax: 0.10.0
libtpu: 0.0.40
codegen_flags: <defaults>
</compile_context>

<pallas_src>
import functools

import jax
import jax.numpy as jnp
from jax.experimental import pallas as pl
from jax.experimental.pallas import tpu as pltpu


# ---------------------------------------------------------------------------
# Pallas kernel: one grid step == one (TB, C, TH) block of x
# ---------------------------------------------------------------------------
def _film_kernel(t_ref, x_ref, w_ref, b_ref, o_ref, *, C):
    # Fused gamma/beta projection: (TB, E) @ (E, 2C) -> (TB, 2C), one MXU GEMM.
    t_blk = t_ref[...].astype(jnp.float32)                            # (TB, E)
    gb = jnp.dot(t_blk, w_ref[...],
                 preferred_element_type=jnp.float32) + b_ref[...]     # (TB, 2C)

    gamma = gb[:, :C][:, :, None]                                     # (TB, C, 1)
    beta = gb[:, C:][:, :, None]                                      # (TB, C, 1)

    x_blk = x_ref[...].astype(jnp.float32)                            # (TB, C, TH)
    o_ref[...] = (gamma * x_blk + beta).astype(o_ref.dtype)


# ---------------------------------------------------------------------------
# block-size selection (VMEM-aware, layout-legal)
# ---------------------------------------------------------------------------
def _pick_h_block(H, C, itemsize, budget):
    """Full H if a row fits the budget; otherwise the largest 128-multiple
    divisor of H that fits (keeps the lane dim legal and dense)."""
    if C * H * itemsize <= budget or H % 128 != 0:
        return H
    best = 128
    th = 128
    while th <= H:
        if H % th == 0 and C * th * itemsize <= budget:
            best = th
        th += 128
    return best


def _pick_batch_block(B, row_bytes, budget):
    """Largest sublane-aligned (multiple-of-8) divisor of B that fits the
    budget; full B if everything fits or no aligned divisor exists."""
    rows_fit = max(1, budget // max(row_bytes, 1))
    if rows_fit >= B:
        return B
    aligned = [d for d in range(8, B + 1, 8) if B % d == 0]
    fitting = [d for d in aligned if d <= rows_fit]
    if fitting:
        return max(fitting)
    if aligned:
        return min(aligned)   # stay aligned even if slightly over budget
    return B                  # no aligned divisor: whole batch in one step


# ---------------------------------------------------------------------------
# wrapper
# ---------------------------------------------------------------------------
def film_forward(x, t, gamma_w, gamma_b, beta_w, beta_b, *,
                 block_budget_bytes=4 << 20):
    """x: (B, C, H), t: (B, E); Linear weights are PyTorch-layout (C, E)."""
    B, C, H = x.shape
    E = t.shape[1]
    assert gamma_w.shape == (C, E) and beta_w.shape == (C, E)
    assert gamma_b.shape == (C,) and beta_b.shape == (C,)
    assert t.shape[0] == B

    # Fuse both projections into one operand with lane axis = 2C, so each grid
    # step issues a single well-shaped GEMM instead of two skinny matvecs.
    w_fused = jnp.concatenate([gamma_w, beta_w], axis=0).T.astype(jnp.float32)  # (E, 2C)
    b_fused = jnp.concatenate([gamma_b, beta_b], axis=0).reshape(1, 2 * C)
    b_fused = b_fused.astype(jnp.float32)                                       # (1, 2C)

    itemsize = jnp.dtype(x.dtype).itemsize
    TH = _pick_h_block(H, C, itemsize, block_budget_bytes)
    TB = _pick_batch_block(B, C * TH * itemsize, block_budget_bytes)
    grid = (B // TB, H // TH)

    # Raise the scoped-VMEM limit only when the chosen blocks need it.
    x_blk_bytes = TB * C * TH * itemsize
    vmem_est = (4 * x_blk_bytes                 # in + out, double-buffered
                + 3 * TB * C * TH * 4           # f32 temporaries
                + 4 * (E * 2 * C + 2 * C + TB * E)
                + (2 << 20))
    vmem_limit = int(min(vmem_est, 100 << 20)) if vmem_est > (30 << 20) else None

    kernel = functools.partial(_film_kernel, C=C)

    return pl.pallas_call(
        kernel,
        out_shape=jax.ShapeDtypeStruct((B, C, H), x.dtype),
        grid=grid,
        in_specs=[
            pl.BlockSpec((TB, E), lambda i, j: (i, 0)),           # t block
            pl.BlockSpec((TB, C, TH), lambda i, j: (i, 0, j)),    # x block
            pl.BlockSpec((E, 2 * C), lambda i, j: (0, 0)),        # fused weights (const)
            pl.BlockSpec((1, 2 * C), lambda i, j: (0, 0)),        # fused bias    (const)
        ],
        out_specs=pl.BlockSpec((TB, C, TH), lambda i, j: (i, 0, j)),
        compiler_params=pltpu.CompilerParams(
            dimension_semantics=("parallel", "parallel"),
            vmem_limit_bytes=vmem_limit),
    )(t, x, w_fused, b_fused)


# ---------------------------------------------------------------------------
# pure-JAX reference (matches the PyTorch forward)
# ---------------------------------------------------------------------------
def ref_film(x, t, gamma_w, gamma_b, beta_w, beta_b):
    gamma = t @ gamma_w.T + gamma_b          # (B, C)
    beta = t @ beta_w.T + beta_b             # (B, C)
    return gamma[:, :, None] * x + beta[:, :, None]


# ---------------------------------------------------------------------------
# self-test
# ---------------------------------------------------------------------------
def _run_case(key, B, E, C, H, **kwargs):
    k1, k2, k3, k4, k5, k6 = jax.random.split(key, 6)
    x = jax.random.normal(k1, (B, C, H), dtype=jnp.float32)
    t = jax.random.normal(k2, (B, E), dtype=jnp.float32)
    gw = 0.1 * jax.random.normal(k3, (C, E), dtype=jnp.float32)
    gb = 0.1 * jax.random.normal(k4, (C,), dtype=jnp.float32)
    bw = 0.1 * jax.random.normal(k5, (C, E), dtype=jnp.float32)
    bb = 0.1 * jax.random.normal(k6, (C,), dtype=jnp.float32)

    out = jax.block_until_ready(film_forward(x, t, gw, gb, bw, bb, **kwargs))
    ref = ref_film(x, t, gw, gb, bw, bb)
    assert out.shape == (B, C, H)
    err = float(jnp.max(jnp.abs(out - ref)))
    assert jnp.allclose(out, ref, atol=1e-4, rtol=1e-4), err


if __name__ == "__main__":
    key = jax.random.PRNGKey(0)
    k_small, k_mid, k_h = jax.random.split(key, 3)

    # small, module-consistent shapes: batch=2, in_channels(E)=32, out_channels(C)=16, H=16
    _run_case(k_small, B=2, E=32, C=16, H=16)

    # tile-aligned config forced onto a multi-step batch grid (TB=8, 2 steps)
    _run_case(k_mid, B=16, E=64, C=128, H=128, block_budget_bytes=1 << 18)

    # long-horizon config exercising the H grid axis (TH=128, 2 steps)
    _run_case(k_h, B=4, E=32, C=8, H=256, block_budget_bytes=1 << 12)

    print("KERNEL_OK")
</pallas_src>

<mosaic_0001>
module attributes {stable_mosaic.version = 11 : i64} {
  func.func @_film_kernel(%arg0: i32, %arg1: i32, %arg2: memref<2x32xf32, #tpu.memory_space<vmem>>, %arg3: memref<2x16x16xf32, #tpu.memory_space<vmem>>, %arg4: memref<32x32xf32, #tpu.memory_space<vmem>>, %arg5: memref<1x32xf32, #tpu.memory_space<vmem>>, %arg6: memref<2x16x16xf32, #tpu.memory_space<vmem>>) attributes {dimension_semantics = [#tpu.dimension_semantics<parallel>, #tpu.dimension_semantics<parallel>], iteration_bounds = array<i64: 1, 1>, scalar_prefetch = 0 : i64, scratch_operands = 0 : i64, tpu.core_type = #tpu.core_type<tc>, window_params = [{transform_indices = @transform_0, window_bounds = array<i64: 2, 32>}, {transform_indices = @transform_1, window_bounds = array<i64: 2, 16, 16>}, {pipeline_mode = #tpu.pipeline_mode<synchronous>, transform_indices = @transform_2, window_bounds = array<i64: 32, 32>}, {pipeline_mode = #tpu.pipeline_mode<synchronous>, transform_indices = @transform_3, window_bounds = array<i64: 1, 32>}, {transform_indices = @transform_4, window_bounds = array<i64: 2, 16, 16>}]} {
    %c0 = arith.constant 0 : index
    %c0_0 = arith.constant 0 : index
    %0 = vector.load %arg2[%c0, %c0_0] : memref<2x32xf32, #tpu.memory_space<vmem>>, vector<2x32xf32>
    %c0_1 = arith.constant 0 : index
    %c0_2 = arith.constant 0 : index
    %1 = vector.load %arg4[%c0_1, %c0_2] : memref<32x32xf32, #tpu.memory_space<vmem>>, vector<32x32xf32>
    %cst = arith.constant dense<0.000000e+00> : vector<2x32xf32>
    %2 = tpu.matmul %0, %1, %cst {dimension_numbers = #tpu.dot_dimension_numbers<[1], [0], [0], [1], [0, 0, 1, 1], [], []>} : vector<2x32xf32>, vector<32x32xf32>, vector<2x32xf32> -> vector<2x32xf32>
    %c0_3 = arith.constant 0 : index
    %c0_4 = arith.constant 0 : index
    %3 = vector.load %arg5[%c0_3, %c0_4] : memref<1x32xf32, #tpu.memory_space<vmem>>, vector<1x32xf32>
    %4 = vector.broadcast %3 : vector<1x32xf32> to vector<2x32xf32>
    %5 = arith.addf %2, %4 : vector<2x32xf32>
    %6 = vector.extract_strided_slice %5 {offsets = [0, 0], sizes = [2, 16], strides = [1, 1]} : vector<2x32xf32> to vector<2x16xf32>
    %7 = vector.shape_cast %6 : vector<2x16xf32> to vector<2x16x1xf32>
    %8 = vector.extract_strided_slice %5 {offsets = [0, 16], sizes = [2, 16], strides = [1, 1]} : vector<2x32xf32> to vector<2x16xf32>
    %9 = vector.shape_cast %8 : vector<2x16xf32> to vector<2x16x1xf32>
    %c0_5 = arith.constant 0 : index
    %c0_6 = arith.constant 0 : index
    %c0_7 = arith.constant 0 : index
    %10 = vector.load %arg3[%c0_5, %c0_6, %c0_7] : memref<2x16x16xf32, #tpu.memory_space<vmem>>, vector<2x16x16xf32>
    %11 = vector.broadcast %7 : vector<2x16x1xf32> to vector<2x16x16xf32>
    %12 = arith.mulf %11, %10 : vector<2x16x16xf32>
    %13 = vector.broadcast %9 : vector<2x16x1xf32> to vector<2x16x16xf32>
    %14 = arith.addf %12, %13 : vector<2x16x16xf32>
    %c0_8 = arith.constant 0 : index
    %c0_9 = arith.constant 0 : index
    %c0_10 = arith.constant 0 : index
    %15 = vector.load %arg6[%c0_8, %c0_9, %c0_10] : memref<2x16x16xf32, #tpu.memory_space<vmem>>, vector<2x16x16xf32>
    tpu.vector_store %arg6[%c0_8, %c0_9, %c0_10], %14 {strides = array<i32>} : memref<2x16x16xf32, #tpu.memory_space<vmem>>, vector<2x16x16xf32>,
    return
  }
  func.func @transform_0(%arg0: i32, %arg1: i32) -> (i32, i32) {
    %c0_i32 = arith.constant 0 : i32
    %c0_i32_0 = arith.constant 0 : i32
    return %arg0, %c0_i32 : i32, i32
  }
  func.func @transform_1(%arg0: i32, %arg1: i32) -> (i32, i32, i32) {
    %c0_i32 = arith.constant 0 : i32
    %c0_i32_0 = arith.constant 0 : i32
    return %arg0, %c0_i32, %arg1 : i32, i32, i32
  }
  func.func @transform_2(%arg0: i32, %arg1: i32) -> (i32, i32) {
    %c0_i32 = arith.constant 0 : i32
    %c0_i32_0 = arith.constant 0 : i32
    %c0_i32_1 = arith.constant 0 : i32
    return %c0_i32, %c0_i32_0 : i32, i32
  }
  func.func @transform_3(%arg0: i32, %arg1: i32) -> (i32, i32) {
    %c0_i32 = arith.constant 0 : i32
    %c0_i32_0 = arith.constant 0 : i32
    %c0_i32_1 = arith.constant 0 : i32
    return %c0_i32, %c0_i32_0 : i32, i32
  }
  func.func @transform_4(%arg0: i32, %arg1: i32) -> (i32, i32, i32) {
    %c0_i32 = arith.constant 0 : i32
    %c0_i32_0 = arith.constant 0 : i32
    return %arg0, %c0_i32, %arg1 : i32, i32, i32
  }
}

</mosaic_0001>

<bundles_post_ra>
// kernel: tpu_custom_call.1
= control target key start
LH: loop header
LB: loop body
LE: loop exit
PB: predicated region body
PF: predicated region fallthrough
CT: control target
= control target key end

     0   :  { %9 = vsyncpa [#allocation3], 0  ;;  %s389_s0 = inlined_call_operand.hbm [shape: f32[2,32], index: 0, kind: input, shape index: {}]   ;;  %s390_s1 = inlined_call_operand.hbm [shape: f32[2,16,16], index: 1, kind: input, shape index: {}]   ;;  %s391_s2 = inlined_call_operand.hbm [shape: f32[32,32], index: 2, kind: input, shape index: {}]   ;;  %s392_s3 = inlined_call_operand.vmem [shape: f32[1,32], index: 3, kind: input, shape index: {}]   ;;  %s393_s4 = inlined_call_operand.hbm [shape: f32[2,16,16], index: 4, kind: output, shape index: {}]  }
   0x1   :  { %10 = vsyncpa [#allocation6], 0 }
   0x2   :  { %11 = vsyncpa [#allocation4], 0  ;;  %s328_s15 = smov [#allocation5]  }
   0x3   :  { %s27_s16 = sshll.u32 %s328_s15, 4  ;;  %s28_s16 = int_to_ptr.vmem [resolvable:$true] %s27_s16 }
   0x4   :  { %s250_s17 = scalar_lea.vmem %s28_s16, 512  ;;  %p255_p1 = scmp.lt.s32.totalorder %s28_s16, %s28_s16 }
   0x5   :  { %p251_p0 = scmp.ne.s32.totalorder %s28_s16, %s250_s17  ;;  %p256_p2 = scmp.lt.s32.totalorder %s250_s17, %s250_s17 }
   0x7   :  { %p257_p3 = por %p256_p2, %p255_p1 }
   0x9   :  { %p258_p4 = pnand %p257_p3, %p251_p0 }
   0xb   :  { %261 = shalt.err (!%p258_p4)
}
   0xc   :  { %s329_s18 = smov 128   ;;  %s330_s19 = smov 8  }
   0xd   :  { %33 = dma.hbm_to_vmem [thread:$0]  %s390_s1, 512, %s28_s16, [#allocation6], %s329_s18, %s329_s18, %s330_s19  }
   0xe   :  { %s331_s22 = smov [#allocation2]   ;;  %s332_s24 = smov [#allocation7]  }
   0xf   :  { %s18_s23 = sshll.u32 %s331_s22, 4  ;;  %s39_s25 = sshll.u32 %s332_s24, 4  ;;  %s19_s23 = int_to_ptr.vmem [resolvable:$true] %s18_s23  ;;  %s40_s25 = int_to_ptr.vmem [resolvable:$true] %s39_s25 }
  0x10   :  { %s270_s26 = scalar_lea.vmem %s19_s23, 32  ;;  %p275_p6 = scmp.lt.s32.totalorder %s19_s23, %s19_s23 }
  0x11   :  { %p271_p5 = scmp.ne.s32.totalorder %s19_s23, %s270_s26  ;;  %p276_p7 = scmp.lt.s32.totalorder %s270_s26, %s270_s26 }
  0x13   :  { %p277_p8 = por %p276_p7, %p275_p6 }
  0x15   :  { %p278_p9 = pnand %p277_p8, %p271_p5 }
  0x17   :  { %281 = shalt.err (!%p278_p9)
}
  0x18   :  { %21 = dma.hbm_to_vmem [thread:$0]  %s389_s0, 32, %s19_s23, [#allocation3]  }
  0x19   :  { %s290_s29 = scalar_lea.vmem %s40_s25, 512  ;;  %p295_p11 = scmp.lt.s32.totalorder %s40_s25, %s40_s25 }
  0x1a   :  { %p291_p10 = scmp.ne.s32.totalorder %s40_s25, %s290_s29  ;;  %p296_p12 = scmp.lt.s32.totalorder %s290_s29, %s290_s29 }
  0x1c   :  { %p297_p13 = por %p296_p12, %p295_p11 }
  0x1e   :  { %p298_p0 = pnand %p297_p13, %p291_p10 }
  0x20   :  { %301 = shalt.err (!%p298_p0)
}
  0x21   :  { %45 = dma.hbm_to_vmem [thread:$0]  %s391_s2, 512, %s40_s25, [#allocation6], %s329_s18, %s329_s18, %s330_s19  }
  0x22   :  { %322 = dma.done.wait [#allocation3], 32  }
  0x23   :  { %323 = vsyncadd [#allocation3], 4294967264 }
  0x24   :  { %324 = dma.done.wait [#allocation6], 1024  }
  0x25   :  { %325 = vsyncadd [#allocation6], 4294966272  ;;  %v333_v0 = vmov 0.0   ;;  %vm334_vm0 = vmmov 0   ;;  %v61_v1 = vld [vmem:[#allocation7 + $0x18] sm:$0xff]  ;;  %v60_v2 = vld [vmem:[#allocation7 + $0x10] sm:$0xff]  ;;  %v143_v6 = vlaneseq }
  0x26   :  { %223 = vmatprep.subr.mxu0 %v333_v0  ;;  %231 = vmatprep.mubr.msk.f32.mxu0 %vm334_vm0, %v333_v0  ;;  %v59_v3 = vld [vmem:[#allocation7 + $0x8] sm:$0xff]  ;;  %v58_v4 = vld [vmem:[#allocation7] sm:$0xff]  ;;  %v57_v5 = vld [vmem:[#allocation2] sm:$0x3]  ;;  %vm69_vm1 = vcmask 261120   ;;  %vm193_vm2 = vcmask 130048  }
  0x27   :  { %224 = vmatpush3.msra.mxu0 %v61_v1  ;;  %v144_v7 = vshrl.u32 %v143_v6, 7  ;;  %v216_v8 = vld [vmem:[%s392_s3] ss:$0 sm:$0xff]  ;;  %v181_v18 = vld [vmem:[#allocation5] sm:$0xff]  ;;  %v182_v20 = vld [vmem:[#allocation5 + $0x8] sm:$0xff]  ;;  %s335_s3 = smov [#allocation8]  }
  0x28   :  { %225 = vmatprep.subr.mxu0 %v333_v0  ;;  %v183_v24 = vld [vmem:[#allocation5 + $0x10] sm:$0xff]  ;;  %v184_v25 = vld [vmem:[#allocation5 + $0x18] sm:$0xff]  ;;  %s203_s5 = sshll.u32 %s335_s3, 4  ;;  %s204_s5 = int_to_ptr.vmem [resolvable:$true] %s203_s5 }
  0x29   :  { %226 = vmatpush3.msra.mxu0 %v60_v2  ;;  %v145_v9 = vsub.s32 0, %v144_v7  ;;  %v156_v10 = vsub.s32 1, %v144_v7  ;;  %s302_s6 = scalar_lea.vmem %s204_s5, 512  ;;  %p307_p2 = scmp.lt.s32.totalorder %s204_s5, %s204_s5 }
  0x2a   :  { %227 = vmatprep.subr.mxu0 %v333_v0  ;;  %p303_p1 = scmp.ne.s32.totalorder %s204_s5, %s302_s6  ;;  %p308_p3 = scmp.lt.s32.totalorder %s302_s6, %s302_s6 }
  0x2b   :  { %228 = vmatpush3.msra.mxu0 %v59_v3 }
  0x2c   :  { %229 = vmatprep.subr.mxu0 %v333_v0  ;;  %p309_p4 = por %p308_p3, %p307_p2 }
  0x2d   :  { %230 = vmatpush3.msra.mxu0 %v58_v4 }
  0x2e   :  { %232 = vmatmul.mubr.msk.f32.vlgmr.msra.gmra.mxu0 %vm69_vm1, %v57_v5  ;;  %p310_p5 = pnand %p309_p4, %p303_p1 }
  0xee   :  { %v139_v11 = vpop.f32.mrf.mxu0 }
  0xef   :  { %v140_v12 = vadd.f32 %v216_v8, %v139_v11 }
  0xf0   :  { %v233_v13 = vpop.f32.mrf.mxu0 }
  0xf1   :  { %v146_v14 = vrot.slane %v140_v12, %v145_v9  ;;  %v157_v15 = vrot.slane %v140_v12, %v156_v10 }
  0xf3   :  { %159 = vbcast.lane.b32.xlu1 %v157_v15, 256  ;;  %148 = vbcast.lane.b32.xlu0 %v146_v14, 256 }
  0xf7   :  { %163 = vbcast.lane.b32.xlu1 %v157_v15, 264  ;;  %152 = vbcast.lane.b32.xlu0 %v146_v14, 264 }
  0xfb   :  { %171 = vbcast.lane.b32.xlu1 %v146_v14, 280  ;;  %167 = vbcast.lane.b32.xlu0 %v146_v14, 272 }
  0xff   :  { %179 = vbcast.lane.b32.xlu1 %v157_v15, 280  ;;  %175 = vbcast.lane.b32.xlu0 %v157_v15, 272 }
 0x165   :  { %v160_v16 = vpop.permute.xlu1 %159  ;;  %v149_v17 = vpop.permute.xlu0 %148 }
 0x166   :  { %v185_v22 = vmul.f32 %v181_v18, %v149_v17  ;;  %v187_v30 = vmul.f32 %v183_v24, %v160_v16 }
 0x169   :  { %v164_v19 = vpop.permute.xlu1 %163  ;;  %v153_v21 = vpop.permute.xlu0 %152 }
 0x16a   :  { %v186_v23 = vmul.f32 %v182_v20, %v153_v21  ;;  %v188_v31 = vmul.f32 %v184_v25, %v164_v19 }
 0x16d   :  { %v172_v26 = vpop.permute.xlu1 %171  ;;  %v168_v27 = vpop.permute.xlu0 %167 }
 0x16e   :  { %v190_v28 = vadd.f32 %v186_v23, %v172_v26  ;;  %v189_v29 = vadd.f32 %v185_v22, %v168_v27 }
 0x170   :  { %195 = vst.msk [vmem:[#allocation8 + $0x8] sm:$0xff] %vm193_vm2, %v190_v28  ;;  %194 = vst.msk [vmem:[#allocation8] sm:$0xff] %vm193_vm2, %v189_v29 }
 0x171   :  { %v180_v32 = vpop.permute.xlu1 %179  ;;  %v176_v33 = vpop.permute.xlu0 %175 }
 0x172   :  { %v192_v34 = vadd.f32 %v188_v31, %v180_v32  ;;  %v191_v35 = vadd.f32 %v187_v30, %v176_v33 }
 0x174   :  { %197 = vst.msk [vmem:[#allocation8 + $0x18] sm:$0xff] %vm193_vm2, %v192_v34  ;;  %196 = vst.msk [vmem:[#allocation8 + $0x10] sm:$0xff] %vm193_vm2, %v191_v35 }
 0x175   :  { %313 = shalt.err (!%p310_p5)
}
 0x176   :  { %209 = dma.vmem_to_hbm [thread:$0]  %s204_s5, 512, %s393_s4, [#allocation4], %s329_s18, %s329_s18, %s330_s19  }
 0x177   :  { %326 = dma.done.wait [#allocation4], 512  }
 0x178   :  { %327 = vsyncadd [#allocation4], 4294966784 }
 0x179   :  { %213 = vsyncpa [#allocation3], 1 }
 0x17a   :  { %214 = vsyncpa [#allocation6], 1 }
 0x17b   :  { %215 = vsyncpa [#allocation4], 1 }

</bundles_post_ra>
